<compile_context>
chip_gen: v6e
topology: v6e:2x2x1
jax: 0.10.0
libtpu: 0.0.40
codegen_flags: <defaults>
</compile_context>

<pallas_src>
import math

import jax
import jax.numpy as jnp
from jax.experimental import pallas as pl
from jax.experimental.pallas import tpu as pltpu

_IN = 784
_HID = 200
_OUT = 10

_HID_PAD = 256   # 2 * 128
_OUT_PAD = 128   # 1 * 128

_TM_MAX = 512    # batch tile (multiple of 16 for bf16 sublanes / 8 for f32)


def _round_up(x, m):
    return ((x + m - 1) // m) * m


def _pad2d(a, rows, cols):
    return jnp.pad(a, ((0, rows - a.shape[0]), (0, cols - a.shape[1])))


def _mlp_kernel(x_ref, w1_ref, b1_ref, w2_ref, b2_ref, w3_ref, b3_ref, o_ref):
    # x_ref: (TM, 784) f32; weights bf16; biases f32 (1, N); out bf16.
    x = x_ref[...].astype(jnp.bfloat16)
    h1 = jnp.dot(x, w1_ref[...], preferred_element_type=jnp.float32) + b1_ref[...]
    h1 = jnp.maximum(h1, 0.0).astype(jnp.bfloat16)
    h2 = jnp.dot(h1, w2_ref[...], preferred_element_type=jnp.float32) + b2_ref[...]
    h2 = jnp.maximum(h2, 0.0).astype(jnp.bfloat16)
    o_ref[...] = (
        jnp.dot(h2, w3_ref[...], preferred_element_type=jnp.float32) + b3_ref[...]
    ).astype(o_ref.dtype)


def prepare_params(params):
    """One-time pad + cast of the parameters to lane-aligned, MXU-friendly
    shapes.  Zero padding is mathematically inert (zero weight rows/cols and
    zero bias pads feed ReLU(0)=0; padded output lanes are sliced off)."""
    w1, b1, w2, b2, w3, b3 = params
    w1p = _pad2d(w1, _IN, _HID_PAD).astype(jnp.bfloat16)        # keep K = 784
    w2p = _pad2d(w2, _HID_PAD, _HID_PAD).astype(jnp.bfloat16)
    w3p = _pad2d(w3, _HID_PAD, _OUT_PAD).astype(jnp.bfloat16)
    b1p = _pad2d(b1, 1, _HID_PAD).astype(jnp.float32)
    b2p = _pad2d(b2, 1, _HID_PAD).astype(jnp.float32)
    b3p = _pad2d(b3, 1, _OUT_PAD).astype(jnp.float32)
    return (w1p, b1p, w2p, b2p, w3p, b3p)


def mlp_forward(x, prepared_params):
    """x: (B, C, H, W) or (B, 784) float32. Returns (B, 10) float32."""
    b = x.shape[0]
    x2d = x.reshape(b, -1).astype(jnp.float32)  # == torch x.view(x.shape[0], -1)

    w1p, b1p, w2p, b2p, w3p, b3p = prepared_params

    # --- batch tiling: keep TM a multiple of 16 and guarantee >= 2 grid steps
    #     (v7x megacore sharding of the "parallel" axis). ---
    tm = min(_TM_MAX, _round_up(max((b + 1) // 2, 1), 16))
    b_pad = max(_round_up(b, tm), 2 * tm)
    xp = jnp.pad(x2d, ((0, b_pad - b), (0, 0)))   # rows only; stays f32
    grid = (b_pad // tm,)

    # x streams through VMEM (full 784 last dim -> legal block); weights and
    # biases use constant index_maps so they stay resident in VMEM.
    x_spec = pl.BlockSpec((tm, _IN), lambda i: (i, 0))
    out_spec = pl.BlockSpec((tm, _OUT_PAD), lambda i: (i, 0))
    w1_spec = pl.BlockSpec((_IN, _HID_PAD), lambda i: (0, 0))
    w2_spec = pl.BlockSpec((_HID_PAD, _HID_PAD), lambda i: (0, 0))
    w3_spec = pl.BlockSpec((_HID_PAD, _OUT_PAD), lambda i: (0, 0))
    b1_spec = pl.BlockSpec((1, _HID_PAD), lambda i: (0, 0))
    b2_spec = pl.BlockSpec((1, _HID_PAD), lambda i: (0, 0))
    b3_spec = pl.BlockSpec((1, _OUT_PAD), lambda i: (0, 0))

    flops = 2 * b_pad * (_IN * _HID_PAD + _HID_PAD * _HID_PAD + _HID_PAD * _OUT_PAD)
    bytes_accessed = (
        b_pad * _IN * 4                                   # x (f32)
        + (w1p.size + w2p.size + w3p.size) * 2            # weights (bf16)
        + (b1p.size + b2p.size + b3p.size) * 4            # biases (f32)
        + b_pad * _OUT_PAD * 2                            # out (bf16)
    )

    out_padded = pl.pallas_call(
        _mlp_kernel,
        out_shape=jax.ShapeDtypeStruct((b_pad, _OUT_PAD), jnp.bfloat16),
        grid=grid,
        in_specs=[x_spec, w1_spec, b1_spec, w2_spec, b2_spec, w3_spec, b3_spec],
        out_specs=out_spec,
        compiler_params=pltpu.CompilerParams(
            dimension_semantics=("parallel",),
            vmem_limit_bytes=32 * 1024 * 1024,
        ),
        cost_estimate=pl.CostEstimate(
            flops=flops, transcendentals=0, bytes_accessed=bytes_accessed
        ),
    )(xp, w1p, b1p, w2p, b2p, w3p, b3p)

    return out_padded[:b, :_OUT].astype(jnp.float32)


def init_params(key, input_size=_IN, hidden=_HID, output_size=_OUT):
    """Deterministic init mimicking nn.Linear's U(-1/sqrt(fan_in), 1/sqrt(fan_in)).
    Weights stored as (in_features, out_features); biases as (1, out)."""
    def linear(k, fan_in, fan_out):
        kw, kb = jax.random.split(k)
        bound = 1.0 / math.sqrt(fan_in)
        w = jax.random.uniform(kw, (fan_in, fan_out), jnp.float32, -bound, bound)
        b = jax.random.uniform(kb, (1, fan_out), jnp.float32, -bound, bound)
        return w, b

    k1, k2, k3 = jax.random.split(key, 3)
    w1, b1 = linear(k1, input_size, hidden)
    w2, b2 = linear(k2, hidden, hidden)
    w3, b3 = linear(k3, hidden, output_size)
    return (w1, b1, w2, b2, w3, b3)


if __name__ == "__main__":
    key = jax.random.PRNGKey(0)
    k_param, k_x = jax.random.split(key)

    # Small MNIST-shaped batch: NCHW (2, 1, 28, 28) -> flattened to (2, 784).
    x = jax.random.normal(k_x, (2, 1, 28, 28), dtype=jnp.float32)
    params = init_params(k_param, input_size=_IN, hidden=_HID, output_size=_OUT)
    prepared = prepare_params(params)   # one-time pad + cast

    out = mlp_forward(x, prepared)
    jax.block_until_ready(out)

    # Pure-JAX reference using the same bf16 operands / f32 accumulation.
    # TODO(synk): results follow the bf16-matmul contract, not a pure-f32
    # PyTorch MLP (they agree to ~1e-2 for MNIST-scale activations).
    w1, b1, w2, b2, w3, b3 = params
    xr = x.reshape(x.shape[0], -1)
    xb = xr.astype(jnp.bfloat16)
    h1 = jnp.dot(xb, w1.astype(jnp.bfloat16), preferred_element_type=jnp.float32) + b1
    h1 = jnp.maximum(h1, 0.0).astype(jnp.bfloat16)
    h2 = jnp.dot(h1, w2.astype(jnp.bfloat16), preferred_element_type=jnp.float32) + b2
    h2 = jnp.maximum(h2, 0.0).astype(jnp.bfloat16)
    ref = jnp.dot(h2, w3.astype(jnp.bfloat16), preferred_element_type=jnp.float32) + b3

    assert out.shape == (2, 10)
    assert jnp.allclose(out, ref, atol=2e-2, rtol=2e-2), (
        f"max abs err {jnp.max(jnp.abs(out - ref))}"
    )

    print("KERNEL_OK")
</pallas_src>

<mosaic_0001>
module attributes {stable_mosaic.version = 11 : i64} {
  func.func @_mlp_kernel(%arg0: i32, %arg1: memref<16x784xf32, #tpu.memory_space<vmem>>, %arg2: memref<784x256xbf16, #tpu.memory_space<vmem>>, %arg3: memref<1x256xf32, #tpu.memory_space<vmem>>, %arg4: memref<256x256xbf16, #tpu.memory_space<vmem>>, %arg5: memref<1x256xf32, #tpu.memory_space<vmem>>, %arg6: memref<256x128xbf16, #tpu.memory_space<vmem>>, %arg7: memref<1x128xf32, #tpu.memory_space<vmem>>, %arg8: memref<16x128xbf16, #tpu.memory_space<vmem>>) attributes {dimension_semantics = [#tpu.dimension_semantics<parallel>], iteration_bounds = array<i64: 2>, scalar_prefetch = 0 : i64, scratch_operands = 0 : i64, tpu.core_type = #tpu.core_type<tc>, window_params = [{transform_indices = @transform_0, window_bounds = array<i64: 16, 784>}, {pipeline_mode = #tpu.pipeline_mode<synchronous>, transform_indices = @transform_1, window_bounds = array<i64: 784, 256>}, {pipeline_mode = #tpu.pipeline_mode<synchronous>, transform_indices = @transform_2, window_bounds = array<i64: 1, 256>}, {pipeline_mode = #tpu.pipeline_mode<synchronous>, transform_indices = @transform_3, window_bounds = array<i64: 256, 256>}, {pipeline_mode = #tpu.pipeline_mode<synchronous>, transform_indices = @transform_4, window_bounds = array<i64: 1, 256>}, {pipeline_mode = #tpu.pipeline_mode<synchronous>, transform_indices = @transform_5, window_bounds = array<i64: 256, 128>}, {pipeline_mode = #tpu.pipeline_mode<synchronous>, transform_indices = @transform_6, window_bounds = array<i64: 1, 128>}, {transform_indices = @transform_7, window_bounds = array<i64: 16, 128>}]} {
    %c0 = arith.constant 0 : index
    %c0_0 = arith.constant 0 : index
    %0 = vector.load %arg1[%c0, %c0_0] : memref<16x784xf32, #tpu.memory_space<vmem>>, vector<16x784xf32>
    %1 = arith.truncf %0 : vector<16x784xf32> to vector<16x784xbf16>
    %c0_1 = arith.constant 0 : index
    %c0_2 = arith.constant 0 : index
    %2 = vector.load %arg2[%c0_1, %c0_2] : memref<784x256xbf16, #tpu.memory_space<vmem>>, vector<784x256xbf16>
    %cst = arith.constant dense<0.000000e+00> : vector<16x256xf32>
    %3 = tpu.matmul %1, %2, %cst {dimension_numbers = #tpu.dot_dimension_numbers<[1], [0], [0], [1], [0, 0, 1, 1], [], []>} : vector<16x784xbf16>, vector<784x256xbf16>, vector<16x256xf32> -> vector<16x256xf32>
    %c0_3 = arith.constant 0 : index
    %c0_4 = arith.constant 0 : index
    %4 = vector.load %arg3[%c0_3, %c0_4] : memref<1x256xf32, #tpu.memory_space<vmem>>, vector<1x256xf32>
    %5 = vector.broadcast %4 : vector<1x256xf32> to vector<16x256xf32>
    %6 = arith.addf %3, %5 : vector<16x256xf32>
    %cst_5 = arith.constant 0.000000e+00 : f32
    %7 = vector.broadcast %cst_5 : f32 to vector<16x256xf32>
    %8 = arith.maximumf %6, %7 : vector<16x256xf32>
    %9 = arith.truncf %8 : vector<16x256xf32> to vector<16x256xbf16>
    %c0_6 = arith.constant 0 : index
    %c0_7 = arith.constant 0 : index
    %10 = vector.load %arg4[%c0_6, %c0_7] : memref<256x256xbf16, #tpu.memory_space<vmem>>, vector<256x256xbf16>
    %cst_8 = arith.constant dense<0.000000e+00> : vector<16x256xf32>
    %11 = tpu.matmul %9, %10, %cst_8 {dimension_numbers = #tpu.dot_dimension_numbers<[1], [0], [0], [1], [0, 0, 1, 1], [], []>} : vector<16x256xbf16>, vector<256x256xbf16>, vector<16x256xf32> -> vector<16x256xf32>
    %c0_9 = arith.constant 0 : index
    %c0_10 = arith.constant 0 : index
    %12 = vector.load %arg5[%c0_9, %c0_10] : memref<1x256xf32, #tpu.memory_space<vmem>>, vector<1x256xf32>
    %13 = vector.broadcast %12 : vector<1x256xf32> to vector<16x256xf32>
    %14 = arith.addf %11, %13 : vector<16x256xf32>
    %cst_11 = arith.constant 0.000000e+00 : f32
    %15 = vector.broadcast %cst_11 : f32 to vector<16x256xf32>
    %16 = arith.maximumf %14, %15 : vector<16x256xf32>
    %17 = arith.truncf %16 : vector<16x256xf32> to vector<16x256xbf16>
    %c0_12 = arith.constant 0 : index
    %c0_13 = arith.constant 0 : index
    %18 = vector.load %arg6[%c0_12, %c0_13] : memref<256x128xbf16, #tpu.memory_space<vmem>>, vector<256x128xbf16>
    %cst_14 = arith.constant dense<0.000000e+00> : vector<16x128xf32>
    %19 = tpu.matmul %17, %18, %cst_14 {dimension_numbers = #tpu.dot_dimension_numbers<[1], [0], [0], [1], [0, 0, 1, 1], [], []>} : vector<16x256xbf16>, vector<256x128xbf16>, vector<16x128xf32> -> vector<16x128xf32>
    %c0_15 = arith.constant 0 : index
    %c0_16 = arith.constant 0 : index
    %20 = vector.load %arg7[%c0_15, %c0_16] : memref<1x128xf32, #tpu.memory_space<vmem>>, vector<1x128xf32>
    %21 = vector.broadcast %20 : vector<1x128xf32> to vector<16x128xf32>
    %22 = arith.addf %19, %21 : vector<16x128xf32>
    %23 = arith.truncf %22 : vector<16x128xf32> to vector<16x128xbf16>
    %c0_17 = arith.constant 0 : index
    %c0_18 = arith.constant 0 : index
    %24 = vector.load %arg8[%c0_17, %c0_18] : memref<16x128xbf16, #tpu.memory_space<vmem>>, vector<16x128xbf16>
    tpu.vector_store %arg8[%c0_17, %c0_18], %23 {strides = array<i32>} : memref<16x128xbf16, #tpu.memory_space<vmem>>, vector<16x128xbf16>,
    return
  }
  func.func @transform_0(%arg0: i32) -> (i32, i32) {
    %c0_i32 = arith.constant 0 : i32
    %c0_i32_0 = arith.constant 0 : i32
    return %arg0, %c0_i32 : i32, i32
  }
  func.func @transform_1(%arg0: i32) -> (i32, i32) {
    %c0_i32 = arith.constant 0 : i32
    %c0_i32_0 = arith.constant 0 : i32
    %c0_i32_1 = arith.constant 0 : i32
    return %c0_i32, %c0_i32_0 : i32, i32
  }
  func.func @transform_2(%arg0: i32) -> (i32, i32) {
    %c0_i32 = arith.constant 0 : i32
    %c0_i32_0 = arith.constant 0 : i32
    %c0_i32_1 = arith.constant 0 : i32
    return %c0_i32, %c0_i32_0 : i32, i32
  }
  func.func @transform_3(%arg0: i32) -> (i32, i32) {
    %c0_i32 = arith.constant 0 : i32
    %c0_i32_0 = arith.constant 0 : i32
    %c0_i32_1 = arith.constant 0 : i32
    return %c0_i32, %c0_i32_0 : i32, i32
  }
  func.func @transform_4(%arg0: i32) -> (i32, i32) {
    %c0_i32 = arith.constant 0 : i32
    %c0_i32_0 = arith.constant 0 : i32
    %c0_i32_1 = arith.constant 0 : i32
    return %c0_i32, %c0_i32_0 : i32, i32
  }
  func.func @transform_5(%arg0: i32) -> (i32, i32) {
    %c0_i32 = arith.constant 0 : i32
    %c0_i32_0 = arith.constant 0 : i32
    %c0_i32_1 = arith.constant 0 : i32
    return %c0_i32, %c0_i32_0 : i32, i32
  }
  func.func @transform_6(%arg0: i32) -> (i32, i32) {
    %c0_i32 = arith.constant 0 : i32
    %c0_i32_0 = arith.constant 0 : i32
    %c0_i32_1 = arith.constant 0 : i32
    return %c0_i32, %c0_i32_0 : i32, i32
  }
  func.func @transform_7(%arg0: i32) -> (i32, i32) {
    %c0_i32 = arith.constant 0 : i32
    %c0_i32_0 = arith.constant 0 : i32
    return %arg0, %c0_i32 : i32, i32
  }
}

</mosaic_0001>

<bundles_post_ra>
// kernel: tpu_custom_call.1
= control target key start
LH: loop header
LB: loop body
LE: loop exit
PB: predicated region body
PF: predicated region fallthrough
CT: control target
= control target key end

     0   :  { %s2662_s0 = inlined_call_operand.hbm [shape: f32[32,784], index: 0, kind: input, shape index: {}]   ;;  %s2663_s1 = inlined_call_operand.hbm [shape: bf16[784,256], index: 1, kind: input, shape index: {}]   ;;  %s2664_s2 = inlined_call_operand.vmem [shape: f32[1,256], index: 2, kind: input, shape index: {}]   ;;  %s2665_s3 = inlined_call_operand.hbm [shape: bf16[256,256], index: 3, kind: input, shape index: {}]   ;;  %s2666_s4 = inlined_call_operand.vmem [shape: f32[1,256], index: 4, kind: input, shape index: {}]   ;;  %s2667_s5 = inlined_call_operand.hbm [shape: bf16[256,128], index: 5, kind: input, shape index: {}]   ;;  %s2668_s6 = inlined_call_operand.vmem [shape: f32[1,128], index: 6, kind: input, shape index: {}]   ;;  %s2669_s7 = inlined_call_operand.hbm [shape: bf16[32,128], index: 7, kind: output, shape index: {}]  }
   0x1   :  { %2674 = sst [smem:[#allocation15_spill]] %s2663_s1 }
   0x2   :  { %12 = vsyncpa [#allocation3], 0 }
   0x3   :  { %14 = vsyncpa [#allocation3 + $0x1], 0 }
   0x4   :  { %15 = vsyncpa [#allocation6], 0 }
   0x5   :  { %16 = vsyncpa [#allocation9], 0 }
   0x6   :  { %17 = vsyncpa [#allocation4], 0 }
   0x7   :  { %19 = vsyncpa [#allocation4 + $0x1], 0  ;;  %s2436_s24 = smov 0   ;;  %s2438_s25 = smov 0  }
   0x8   :  { %s2440_s26 = smov 0   ;;  %s2442_s27 = smov 0  }
   0x9 LB: > { %s2457_s28 = sadd.s32 4294967295, %s2380_s27   ;;  %s1703_s29 = sadd.s32 4294967294, %s2380_s27   ;;  %s2380_s27 = sphi %s2442_s27, %s2695_s27   ;;  %s2376_s26 = sphi %s2440_s26, %s2694_s26   ;;  %s2372_s25 = sphi %s2438_s25, %s2693_s25   ;;  %s2368_s24 = sphi %s2436_s24, %s2692_s24  }
   0xa   : > { %p45_p0 = scmp.ne.s32.totalorder %s2372_s25, %s2368_s24  ;;  %p2670_p1 = scmp.eq.s32.totalorder %s2457_s28, 0 }
   0xb   : > { %p201_p3 = scmp.eq.s32.totalorder %s1703_s29, 1  ;;  %p1704_p5 = scmp.ge.s32.totalorder %s2380_s27, 1 }
   0xc   : > { %p2466_p4 = por %p2670_p1, %p45_p0  ;;  %p208_p7 = scmp.lt.s32.totalorder %s2380_s27, 3 }
   0xd   : > { %p2471_p6 = por %p201_p3, %p45_p0  ;;  %s2382_s10 = smov [#allocation5]  }
   0xe   : > { %s2675_s30 = scalar_select %p2466_p4, 1, 0 }
   0xf   : > { %s2676_s8 = scalar_select %p2471_p6, 1, 0 }
  0x10   : > { %p2476_p8 = pnand %p1704_p5, %p208_p7  ;;  %s220_s11 = sshll.u32 %s2382_s10, 4  ;;  %s221_s11 = int_to_ptr.vmem [resolvable:$true] %s220_s11 }
  0x11   : > { %s2383_s13 = smov [#allocation7]   ;;  %s2384_s15 = smov [#allocation8]  }
  0x12   : > { %s2677_s9 = scalar_select %p2476_p8, 1, 0 }
  0x13   : > { %p1921_p9 = pneg %p2476_p8  ;;  %s236_s14 = sshll.u32 %s2383_s13, 4  ;;  %s237_s14 = int_to_ptr.vmem [resolvable:$true] %s236_s14 }
  0x14   : > { %s252_s16 = sshll.u32 %s2384_s15, 4  ;;  %s2213_s17 = scalar_lea.vmem %s221_s11, 12544  ;;  %s253_s16 = int_to_ptr.vmem [resolvable:$true] %s252_s16 }
  0x15   : > { %p2485_p11 = pnand %p1921_p9, %p2670_p1  ;;  %p2214_p13 = scmp.ne.s32.totalorder %s221_s11, %s2213_s17 }
  0x16   : > { %p2221_p5 = scmp.lt.s32.totalorder %s221_s11, %s221_s11  ;;  %p2222_p7 = scmp.lt.s32.totalorder %s2213_s17, %s2213_s17 }
  0x17   : > { %p2204_p12 = pneg %p2485_p11 }
  0x18   : > { %p2223_p9 = por %p2222_p7, %p2221_p5 }
  0x19   : > { %p2216_p0 = pnand %p2214_p13, %p2204_p12 }
  0x1b   : > { %p2217_p3 = pneg %p2216_p0 }
  0x1d   : > { %p2224_p10 = pnand %p2223_p9, %p2217_p3 }
  0x1f   : > { %2227 = shalt.err (!%p2224_p10)
}
  0x20   : > { %s2385_s18 = smov 128   ;;  %s2386_s19 = smov 8  }
  0x21   : > { %s2679_s1 = sld [smem:[#allocation15_spill]]  ;;  %s2239_s22 = scalar_lea.vmem %s237_s14, 4096 }
  0x22   : > { %p2240_p1 = scmp.ne.s32.totalorder %s237_s14, %s2239_s22  ;;  %p2247_p2 = scmp.lt.s32.totalorder %s237_s14, %s237_s14 }
  0x23   : > { %p2248_p6 = scmp.lt.s32.totalorder %s2239_s22, %s2239_s22 }
  0x24   : > { %p2242_p13 = pnand %p2240_p1, %p2204_p12 }
  0x25   : > { %p2249_p5 = por %p2248_p6, %p2247_p2 }
  0x26   : > { %p2243_p0 = pneg %p2242_p13 }
  0x27   : > { %1924 = dma.hbm_to_vmem [thread:$0]  (!%p2485_p11), %s2679_s1, 12544, %s221_s11, [#allocation6], %s2385_s18, %s2385_s18, %s2386_s19  }
  0x28   : > { %p2250_p3 = pnand %p2249_p5, %p2243_p0 }
  0x2a   : > { %2253 = shalt.err (!%p2250_p3)
}
  0x2b   : > { %1927 = dma.hbm_to_vmem [thread:$0]  (!%p2485_p11), %s2665_s3, 4096, %s237_s14, [#allocation6], %s2385_s18, %s2385_s18, %s2386_s19  }
  0x2c   : > { %s2265_s10 = scalar_lea.vmem %s253_s16, 2048  ;;  %p2273_p9 = scmp.lt.s32.totalorder %s253_s16, %s253_s16 }
  0x2d   : > { %p2266_p10 = scmp.ne.s32.totalorder %s253_s16, %s2265_s10  ;;  %p2274_p13 = scmp.lt.s32.totalorder %s2265_s10, %s2265_s10 }
  0x2f   : > { %p2268_p7 = pnand %p2266_p10, %p2204_p12  ;;  %p2275_p4 = por %p2274_p13, %p2273_p9 }
  0x31   : > { %p2269_p1 = pneg %p2268_p7 }
  0x33   : > { %p2276_p2 = pnand %p2275_p4, %p2269_p1 }
  0x35   : > { %2279 = shalt.err (!%p2276_p2)
}
  0x36   : > { %s2387_s11 = smov 64   ;;  %s2388_s13 = smov 4  }
  0x37   : > { %1930 = dma.hbm_to_vmem [thread:$0]  (!%p2485_p11), %s2667_s5, 2048, %s253_s16, [#allocation9], %s2387_s11, %s2387_s11, %s2388_s13  }
  0x38   : > { %s2516_s17 = sadd.s32 1, %s2380_s27   ;;  %s32_s19 = sadd.s32 1, %s2376_s26 }
  0x39   : > { %s29_s18 = ssub.s32 %s2380_s27, %s2516_s17  ;;  %p39_p6 = scmp.ne.s32.totalorder %s2376_s26, %s2372_s25 }
  0x3a   : > { %p30_p4 = scmp.eq.s32.totalorder %s29_s18, 0  ;;  %p40_p12 = scmp.eq.s32.totalorder %s2380_s27, 0 }
  0x3b   : > { %p1942_p0 = scmp.lt.s32.totalorder %s2380_s27, 2  ;;  %p2680_p3 = scmp.eq.s32.totalorder %s2457_s28, 1 }
  0x3c   : > { %s2526_s20 = scalar_select %p30_p4, %s2376_s26, %s32_s19  }
  0x3d   : > { %p41_p5 = por %p40_p12, %p39_p6  ;;  %p2530_p10 = por %p2680_p3, %p39_p6 }
  0x3e   : > { %s269_s12 = sand.u32 1, %s2376_s26   ;;  %s1903_s22 = smul.u32 1792, %s2380_s27 }
  0x3f   : > { %s2681_s21 = scalar_select %p2530_p10, 1, 0 }
  0x40   : > { %s1902_s16 = smul.u32 112, %s269_s12  ;;  %s2539_s10 = scalar_lea.hbm %s2662_s0, %s1903_s22 }
  0x41   : > { %p2541_p11 = pnand %p1942_p0, %p41_p5  ;;  %s2547_s15 = scalar_lea.sflag [#allocation3], %s269_s12 }
  0x42   : > { %s273_s13 = scalar_lea.vmem [#allocation2], %s1902_s16  ;;  %s2280_s18 = scalar_lea.hbm %s2539_s10, 1792 }
  0x43   : > { %s281_s14 = sshll.u32 %s273_s13, 4  ;;  %p2281_p7 = scmp.ne.s32.totalorder %s2539_s10, %s2280_s18  ;;  %s2545_s14 = int_to_ptr.vmem [resolvable:$true] %s281_s14 }
  0x44   : > { %p2282_p1 = pneg %p2541_p11  ;;  %s2285_s23 = scalar_lea.hbm %s2662_s0, 3584 }
  0x45   : > { %p2286_p2 = scmp.lt.s32.totalorder %s2539_s10, %s2662_s0  ;;  %p2287_p4 = scmp.lt.s32.totalorder %s2285_s23, %s2280_s18 }
  0x46   : > { %p2283_p9 = pnand %p2282_p1, %p2281_p7 }
  0x47   : > { %p2288_p6 = por %p2287_p4, %p2286_p2 }
  0x48   : > { %p2284_p13 = pneg %p2283_p9 }
  0x4a   : > { %p2289_p12 = pnand %p2288_p6, %p2284_p13 }
  0x4c   : > { %2292 = shalt.err (!%p2289_p12)
}
  0x4d   : > { %s2293_s12 = scalar_lea.vmem %s2545_s14, 1792  ;;  %s2389_s16 = smov [#allocation2]  }
  0x4e   : > { %p2294_p0 = scmp.ne.s32.totalorder %s2545_s14, %s2293_s12  ;;  %s2298_s13 = sshll.u32 %s2389_s16, 4  ;;  %s2299_s13 = int_to_ptr.vmem [resolvable:$false] %s2298_s13 }
  0x4f   : > { %s2300_s19 = scalar_lea.vmem %s2299_s13, 3584  ;;  %p2301_p7 = scmp.lt.s32.totalorder %s2545_s14, %s2299_s13 }
  0x50   : > { %p2296_p5 = pnand %p2294_p0, %p2282_p1  ;;  %p2302_p9 = scmp.lt.s32.totalorder %s2300_s19, %s2293_s12 }
  0x52   : > { %p2297_p3 = pneg %p2296_p5  ;;  %p2303_p10 = por %p2302_p9, %p2301_p7 }
  0x54   : > { %p2304_p8 = pnand %p2303_p10, %p2297_p3 }
  0x56   : > { %2307 = shalt.err (!%p2304_p8)
}
  0x57   : > { %s2390_s1 = smov 896   ;;  %s2391_s18 = smov 56  }
  0x58   : > { %1934 = dma.hbm_to_vmem [thread:$0]  (!%p2541_p11), %s2539_s10, 1792, %s2545_s14, %s2547_s15, %s2390_s1, %s2390_s1, %s2391_s18  }
  0x59   : > { %p2683_p1 = scmp.ne.s32.totalorder %s2677_s9, 0 }
  0x5a   : > { %s2571_s22 = sand.u32 (!%p2683_p1), 1, %s2372_s25   ;;  %p2684_p8 = scmp.ne.s32.totalorder (!%p2683_p1), %s2675_s30, 0 }
  0x5b   : > { %293 = sbr.rel (%p2683_p1) target bundleno = 865 (0x361), region = 48  ;;  %s296_s29 = scalar_lea.sflag (!%p2683_p1), [#allocation3], %s2571_s22 }
  0x5c   : > { %s1904_s23 = smul.u32 (!%p2683_p1), 112, %s2571_s22 }
  0x5e   : > { %s2575_s12 = scalar_lea.vmem (!%p2683_p1), [#allocation2], %s1904_s23 }
  0x60   : > { %2351 = dma.done.wait (%p2684_p8), %s296_s29, 1792  }
  0x61   : > { %2353 = vsyncadd (%p2684_p8), %s296_s29, 4294965504  ;;  %p2685_p10 = scmp.eq.s32.totalorder %s2457_s28, 0 }
  0x63   : > { %2355 = dma.done.wait (%p2685_p10), [#allocation6], 16640   ;;  %p2686_p11 = pmov %p2685_p10 }
  0x64   : > { %p2687_p13 = pmov %p2685_p10 }
  0x65   : > { %2357 = vsyncadd (%p2686_p11), [#allocation6], 4294950656 }
  0x66   : > { %2359 = dma.done.wait (%p2687_p13), [#allocation9], 2048   ;;  %p2688_p2 = pmov %p2685_p10 }
  0x67   : > { %v1991_v0 = vld [vmem:[#allocation5 + $0x74] ss:$8 sps:$4 sm:$0xff]   ;;  %v1993_v1 = vld [vmem:[#allocation5 + $0x70] ss:$8 sps:$4 sm:$0xff]   ;;  %v1997_v4 = vld [vmem:[#allocation5 + $0x64] ss:$8 sps:$4 sm:$0xff]  }
  0x68   : > { %2361 = vsyncadd (%p2688_p2), [#allocation9], 4294965248  ;;  %970 = vmatprep.subr.bf16.mxu0 %v1991_v0  ;;  %v1994_v2 = vld [vmem:[#allocation5 + $0x174] ss:$8 sps:$4 sm:$0xff]   ;;  %v1996_v3 = vld [vmem:[#allocation5 + $0x170] ss:$8 sps:$4 sm:$0xff]  }
  0x69   : > { %971 = vmatpush1.bf16.msra.mxu0 %v1993_v1  ;;  %v1999_v5 = vld [vmem:[#allocation5 + $0x60] ss:$8 sps:$4 sm:$0xff]   ;;  %1013 = vmatprep.subr.bf16.mxu1 %v1994_v2  ;;  %v2000_v6 = vld [vmem:[#allocation5 + $0x164] ss:$8 sps:$4 sm:$0xff]   ;;  %v2003_v8 = vld [vmem:[#allocation5 + $0x54] ss:$8 sps:$4 sm:$0xff]  }
  0x6a   : > { %1014 = vmatpush1.bf16.msra.mxu1 %v1996_v3  ;;  %972 = vmatprep.subr.bf16.mxu0 %v1997_v4  ;;  %v2002_v7 = vld [vmem:[#allocation5 + $0x160] ss:$8 sps:$4 sm:$0xff]   ;;  %v2005_v9 = vld [vmem:[#allocation5 + $0x50] ss:$8 sps:$4 sm:$0xff]   ;;  %v2006_v10 = vld [vmem:[#allocation5 + $0x154] ss:$8 sps:$4 sm:$0xff]  }
  0x6b   : > { %1015 = vmatprep.subr.bf16.mxu1 %v2000_v6  ;;  %v2009_v11 = vld [vmem:[#allocation5 + $0x44] ss:$8 sps:$4 sm:$0xff]   ;;  %v2008_v12 = vld [vmem:[#allocation5 + $0x150] ss:$8 sps:$4 sm:$0xff]   ;;  %v2011_v14 = vld [vmem:[#allocation5 + $0x40] ss:$8 sps:$4 sm:$0xff]  }
  0x6c   : > { %v2012_v13 = vld [vmem:[#allocation5 + $0x144] ss:$8 sps:$4 sm:$0xff]   ;;  %v2015_v15 = vld [vmem:[#allocation5 + $0x34] ss:$8 sps:$4 sm:$0xff]   ;;  %v2014_v16 = vld [vmem:[#allocation5 + $0x140] ss:$8 sps:$4 sm:$0xff]  }
  0x6d   : > { %973 = vmatpush1.bf16.msra.mxu0 %v1999_v5  ;;  %v2018_v17 = vld [vmem:[#allocation5 + $0x134] ss:$8 sps:$4 sm:$0xff]   ;;  %v2017_v18 = vld [vmem:[#allocation5 + $0x30] ss:$8 sps:$4 sm:$0xff]   ;;  %v2021_v19 = vld [vmem:[#allocation5 + $0x24] ss:$8 sps:$4 sm:$0xff]  }
  0x6e   : > { %974 = vmatprep.subr.bf16.mxu0 %v2003_v8  ;;  %1016 = vmatpush1.bf16.msra.mxu1 %v2002_v7  ;;  %v2020_v20 = vld [vmem:[#allocation5 + $0x130] ss:$8 sps:$4 sm:$0xff]   ;;  %v2024_v21 = vld [vmem:[#allocation5 + $0x124] ss:$8 sps:$4 sm:$0xff]   ;;  %v2023_v22 = vld [vmem:[#allocation5 + $0x20] ss:$8 sps:$4 sm:$0xff]  }
  0x6f   : > { %1017 = vmatprep.subr.bf16.mxu1 %v2006_v10  ;;  %v2027_v23 = vld [vmem:[#allocation5 + $0x14] ss:$8 sps:$4 sm:$0xff]   ;;  %v2026_v24 = vld [vmem:[#allocation5 + $0x120] ss:$8 sps:$4 sm:$0xff]   ;;  %v2029_v26 = vld [vmem:[#allocation5 + $0x10] ss:$8 sps:$4 sm:$0xff]  }
  0x70   : > { %v2030_v25 = vld [vmem:[#allocation5 + $0x114] ss:$8 sps:$4 sm:$0xff]   ;;  %v2033_v27 = vld [vmem:[#allocation5 + $0x4] ss:$8 sps:$4 sm:$0xff]   ;;  %v2032_v28 = vld [vmem:[#allocation5 + $0x110] ss:$8 sps:$4 sm:$0xff]  }
  0x71   : > { %975 = vmatpush1.bf16.msra.mxu0 %v2005_v9  ;;  %v2036_v29 = vld [vmem:[#allocation5 + $0x104] ss:$8 sps:$4 sm:$0xff]   ;;  %v2035_v30 = vld [vmem:[#allocation5] ss:$8 sps:$4 sm:$0xff]   ;;  %v2039_v31 = vld [vmem:[#allocation5 + $0xf4] ss:$8 sps:$4 sm:$0xff]  }
  0x72   : > { %976 = vmatprep.subr.bf16.mxu0 %v2009_v11  ;;  %1018 = vmatpush1.bf16.msra.mxu1 %v2008_v12  ;;  %v2038_v32 = vld [vmem:[#allocation5 + $0x100] ss:$8 sps:$4 sm:$0xff]   ;;  %v2042_v33 = vld [vmem:[#allocation5 + $0x1f4] ss:$8 sps:$4 sm:$0xff]   ;;  %v2041_v34 = vld [vmem:[#allocation5 + $0xf0] ss:$8 sps:$4 sm:$0xff]  }
  0x73   : > { %1019 = vmatprep.subr.bf16.mxu1 %v2012_v13  ;;  %v2045_v35 = vld [vmem:[#allocation5 + $0xe4] ss:$8 sps:$4 sm:$0xff]   ;;  %v2044_v36 = vld [vmem:[#allocation5 + $0x1f0] ss:$8 sps:$4 sm:$0xff]   ;;  %v2047_v38 = vld [vmem:[#allocation5 + $0xe0] ss:$8 sps:$4 sm:$0xff]  }
  0x74   : > { %v2048_v37 = vld [vmem:[#allocation5 + $0x1e4] ss:$8 sps:$4 sm:$0xff]   ;;  %v2051_v39 = vld [vmem:[#allocation5 + $0xd4] ss:$8 sps:$4 sm:$0xff]   ;;  %v2050_v40 = vld [vmem:[#allocation5 + $0x1e0] ss:$8 sps:$4 sm:$0xff]  }
  0x75   : > { %977 = vmatpush1.bf16.msra.mxu0 %v2011_v14  ;;  %v2054_v41 = vld [vmem:[#allocation5 + $0x1d4] ss:$8 sps:$4 sm:$0xff]   ;;  %v2053_v42 = vld [vmem:[#allocation5 + $0xd0] ss:$8 sps:$4 sm:$0xff]   ;;  %v2057_v43 = vld [vmem:[#allocation5 + $0xc4] ss:$8 sps:$4 sm:$0xff]  }
  0x76   : > { %978 = vmatprep.subr.bf16.mxu0 %v2015_v15  ;;  %1020 = vmatpush1.bf16.msra.mxu1 %v2014_v16  ;;  %v2056_v44 = vld [vmem:[#allocation5 + $0x1d0] ss:$8 sps:$4 sm:$0xff]   ;;  %v2060_v45 = vld [vmem:[#allocation5 + $0x1c4] ss:$8 sps:$4 sm:$0xff]   ;;  %v2059_v48 = vld [vmem:[#allocation5 + $0xc0] ss:$8 sps:$4 sm:$0xff]  }
  0x77   : > { %1021 = vmatprep.subr.bf16.mxu1 %v2018_v17  ;;  %v346_v46 = vld [vmem:[%s2575_s12 + $0x8] sm:$0xff]  ;;  %v353_v47 = vld [vmem:[%s2575_s12 + $0x40] sm:$0xff]  ;;  %v348_v52 = vld [vmem:[%s2575_s12 + $0x18] sm:$0xff]  ;;  %vm966_vm0 = vcmask 130048   ;;  %s1716_s14 = sshll.u32 %s2571_s22, 3  ;;  %s1874_s13 = sshll.u32 %s2457_s28, 7 }
  0x78   : > { %v360_v49 = vpack.c.bf16 %v353_v47, %v346_v46  ;;  %v2063_v50 = vld [vmem:[#allocation5 + $0xb4] ss:$8 sps:$4 sm:$0xff]   ;;  %v2062_v51 = vld [vmem:[#allocation5 + $0x1c0] ss:$8 sps:$4 sm:$0xff]   ;;  %v2065_v56 = vld [vmem:[#allocation5 + $0xb0] ss:$8 sps:$4 sm:$0xff]   ;;  %s2617_s29 = scalar_lea.hbm %s2669_s7, %s1874_s13 }
  0x79   : > { %979 = vmatpush1.bf16.msra.mxu0 %v2017_v18  ;;  %v355_v53 = vld [vmem:[%s2575_s12 + $0x50] sm:$0xff]  ;;  %v345_v5 = vld [vmem:[%s2575_s12] sm:$0xff]  ;;  %v352_v7 = vld [vmem:[%s2575_s12 + $0x38] sm:$0xff]  ;;  %s341_s19 = scalar_lea.vmem [#allocation10], %s1716_s14  ;;  %p2689_p6 = scmp.ne.s32.totalorder %s2681_s21, 0 }
  0x7a   : > { %980 = vmatprep.subr.bf16.mxu0 %v2021_v19  ;;  %1022 = vmatpush1.bf16.msra.mxu1 %v2020_v20  ;;  %v2066_v54 = vld [vmem:[#allocation5 + $0x1b4] ss:$8 sps:$4 sm:$0xff]   ;;  %v362_v55 = vpack.c.bf16 %v355_v53, %v348_v52  ;;  %v2069_v57 = vld [vmem:[#allocation5 + $0xa4] ss:$8 sps:$4 sm:$0xff]   ;;  %v2068_v58 = vld [vmem:[#allocation5 + $0x1b0] ss:$8 sps:$4 sm:$0xff]   ;;  %v359_v11 = vpack.c.bf16 %v352_v7, %v345_v5 }
  0x7b   : > { %1023 = vmatprep.subr.bf16.mxu1 %v2024_v21  ;;  %1002 = vmatprep.mubr.bf16.mxu0 %v360_v49  ;;  %v2072_v59 = vld [vmem:[#allocation5 + $0x1a4] ss:$8 sps:$4 sm:$0xff]   ;;  %v2071_v60 = vld [vmem:[#allocation5 + $0xa0] ss:$8 sps:$4 sm:$0xff]   ;;  %v2075_v61 = vld [vmem:[#allocation5 + $0x94] ss:$8 sps:$4 sm:$0xff]  }
  0x7c   : > { %1045 = vmatprep.mubr.bf16.mxu1 %v362_v55  ;;  %v2074_v62 = vld [vmem:[#allocation5 + $0x1a0] ss:$8 sps:$4 sm:$0xff]   ;;  %v2078_v63 = vld [vmem:[#allocation5 + $0x194] ss:$8 sps:$4 sm:$0xff]   ;;  %v2077_v0 = vld [vmem:[#allocation5 + $0x90] ss:$8 sps:$4 sm:$0xff]  }
  0x7d   : > { %981 = vmatpush1.bf16.msra.mxu0 %v2023_v22  ;;  %v2080_v1 = vld [vmem:[#allocation5 + $0x190] ss:$8 sps:$4 sm:$0xff]   ;;  %v2081_v2 = vld [vmem:[#allocation5 + $0x84] ss:$8 sps:$4 sm:$0xff]   ;;  %v2083_v3 = vld [vmem:[#allocation5 + $0x80] ss:$8 sps:$4 sm:$0xff]  }
  0x7e   : > { %982 = vmatprep.subr.bf16.mxu0 %v2027_v23  ;;  %1024 = vmatpush1.bf16.msra.mxu1 %v2026_v24  ;;  %v2084_v4 = vld [vmem:[#allocation5 + $0x184] ss:$8 sps:$4 sm:$0xff]   ;;  %v2086_v6 = vld [vmem:[#allocation5 + $0x180] ss:$8 sps:$4 sm:$0xff]   ;;  %v2089_v8 = vld [vmem:[#allocation5 + $0x274] ss:$8 sps:$4 sm:$0xff]  }
  0x7f   : > { %1025 = vmatprep.subr.bf16.mxu1 %v2030_v25  ;;  %v347_v9 = vld [vmem:[%s2575_s12 + $0x10] sm:$0xff]  ;;  %v354_v10 = vld [vmem:[%s2575_s12 + $0x48] sm:$0xff]  ;;  %v2392_v21 = vmov 0   ;;  %v357_v24 = vld [vmem:[%s2575_s12 + $0x60] sm:$0xff]  ;;  %s1601_s1 = sshll.u32 %s341_s19, 4  ;;  %s2393_s28 = smov [#allocation10]   ;;  %s2619_s1 = int_to_ptr.vmem [resolvable:$true] %s1601_s1 }
  0x80   : > { %v2087_v12 = vld [vmem:[#allocation5 + $0x270] ss:$8 sps:$4 sm:$0xff]   ;;  %v361_v13 = vpack.c.bf16 %v354_v10, %v347_v9  ;;  %v2092_v14 = vld [vmem:[#allocation5 + $0x264] ss:$8 sps:$4 sm:$0xff]   ;;  %v2132_v15 = vld [vmem:[#allocation5 + $0x300] ss:$8 sps:$4 sm:$0xff]  }
  0x81   : > { %983 = vmatpush1.bf16.msra.mxu0 %v2029_v26  ;;  %v2134_v16 = vld [vmem:[#allocation5 + $0x304] ss:$8 sps:$4 sm:$0xff]   ;;  %v2090_v17 = vld [vmem:[#allocation5 + $0x260] ss:$8 sps:$4 sm:$0xff]   ;;  %v2095_v18 = vld [vmem:[#allocation5 + $0x254] ss:$8 sps:$4 sm:$0xff]  }
  0x82   : > { %984 = vmatprep.subr.bf16.mxu0 %v2033_v27  ;;  %1026 = vmatpush1.bf16.msra.mxu1 %v2032_v28  ;;  %v350_v19 = vld [vmem:[%s2575_s12 + $0x28] sm:$0xff]  ;;  %v351_v22 = vld [vmem:[%s2575_s12 + $0x30] sm:$0xff]  ;;  %v349_v53 = vld [vmem:[%s2575_s12 + $0x20] sm:$0xff]  ;;  %s2308_s30 = scalar_lea.vmem %s2619_s1, 128  ;;  %s2312_s9 = sshll.u32 %s2393_s28, 4  ;;  %s2313_s9 = int_to_ptr.vmem [resolvable:$false] %s2312_s9 }
  0x83   : > { %1027 = vmatprep.subr.bf16.mxu1 %v2036_v29  ;;  %v2093_v20 = vld [vmem:[#allocation5 + $0x250] ss:$8 sps:$4 sm:$0xff]   ;;  %v2098_v25 = vld [vmem:[#allocation5 + $0x244] ss:$8 sps:$4 sm:$0xff]   ;;  %v364_v26 = vpack.c.bf16 %v357_v24, %v350_v19  ;;  %v2096_v28 = vld [vmem:[#allocation5 + $0x240] ss:$8 sps:$4 sm:$0xff]   ;;  %p2309_p4 = scmp.ne.s32.totalorder %s2619_s1, %s2308_s30  ;;  %p2315_p5 = scmp.lt.s32.totalorder %s2619_s1, %s2313_s9 }
  0x84   : > { %v358_v23 = vld [vmem:[%s2575_s12 + $0x68] sm:$0xff]  ;;  %s2314_s10 = scalar_lea.vmem %s2313_s9, 256 }
  0x85   : > { %985 = vmatpush1.bf16.msra.mxu0 %v2035_v30  ;;  %v365_v27 = vpack.c.bf16 %v358_v23, %v351_v22  ;;  %v2101_v29 = vld [vmem:[#allocation5 + $0x234] ss:$8 sps:$4 sm:$0xff]   ;;  %v2099_v30 = vld [vmem:[#allocation5 + $0x230] ss:$8 sps:$4 sm:$0xff]   ;;  %v2128_v47 = vld [vmem:[#allocation5 + $0x2a4] ss:$8 sps:$4 sm:$0xff]   ;;  %p2310_p12 = pnand %p2309_p4, %p2689_p6  ;;  %p2316_p3 = scmp.lt.s32.totalorder %s2314_s10, %s2308_s30 }
  0x86   : > { %986 = vmatprep.subr.bf16.mxu0 %v2039_v31  ;;  %1028 = vmatpush1.bf16.msra.mxu1 %v2038_v32  ;;  %v2104_v31 = vld [vmem:[#allocation5 + $0x224] ss:$8 sps:$4 sm:$0xff]   ;;  %v2102_v32 = vld [vmem:[#allocation5 + $0x220] ss:$8 sps:$4 sm:$0xff]   ;;  %v2123_v46 = vld [vmem:[#allocation5 + $0x2b0] ss:$8 sps:$4 sm:$0xff]  }
  0x87   : > { %1029 = vmatprep.subr.bf16.mxu1 %v2042_v33  ;;  %v2107_v33 = vld [vmem:[#allocation5 + $0x214] ss:$8 sps:$4 sm:$0xff]   ;;  %v2135_v52 = vld [vmem:[#allocation5 + $0x280] ss:$8 sps:$4 sm:$0xff]   ;;  %v2159_v7 = vld [vmem:[#allocation7] ss:$8 sps:$4 sm:$0xff]   ;;  %p2311_p0 = pneg %p2310_p12  ;;  %p2317_p7 = por %p2316_p3, %p2315_p5 }
  0x88   : > { %v2131_v49 = vld [vmem:[#allocation5 + $0x294] ss:$8 sps:$4 sm:$0xff]   ;;  %v2156_v5 = vld [vmem:[#allocation7 + $0x10] ss:$8 sps:$4 sm:$0xff]   ;;  %v2177_v19 = vld [vmem:[#allocation7 + $0xa0] ss:$8 sps:$4 sm:$0xff]  }
  0x89   : > { %987 = vmatpush2.bf16.msra.mxu0 %v2041_v34  ;;  %v2105_v34 = vld [vmem:[#allocation5 + $0x210] ss:$8 sps:$4 sm:$0xff]   ;;  %v2162_v9 = vld [vmem:[#allocation7 + $0xf0] ss:$8 sps:$4 sm:$0xff]   ;;  %v2167_v10 = vld [vmem:[#allocation7 + $0xe4] ss:$8 sps:$4 sm:$0xff]   ;;  %p2318_p9 = pnand %p2317_p7, %p2311_p0 }
  0x8a   : > { %988 = vmatprep.subr.bf16.mxu0 %v2045_v35  ;;  %1030 = vmatpush2.bf16.msra.mxu1 %v2044_v36  ;;  %v2110_v35 = vld [vmem:[#allocation5 + $0x204] ss:$8 sps:$4 sm:$0xff]   ;;  %v2108_v36 = vld [vmem:[#allocation5 + $0x200] ss:$8 sps:$4 sm:$0xff]   ;;  %v2185_v22 = vld [vmem:[#allocation7 + $0x84] ss:$8 sps:$4 sm:$0xff]  }
  0x8b   : > { %1031 = vmatprep.subr.bf16.mxu1 %v2048_v37  ;;  %v2113_v37 = vld [vmem:[#allocation5 + $0x2f4] ss:$8 sps:$4 sm:$0xff]   ;;  %v2183_v23 = vld [vmem:[#allocation7 + $0x80] ss:$8 sps:$4 sm:$0xff]   ;;  %v2186_v24 = vld [vmem:[#allocation8 + $0x78] sm:$0xff]  }
  0x8d   : > { %989 = vmatpush2.bf16.msra.mxu0 %v2047_v38  ;;  %v2111_v38 = vld [vmem:[#allocation5 + $0x2f0] ss:$8 sps:$4 sm:$0xff]  }
  0x8e   : > { %990 = vmatprep.subr.bf16.mxu0 %v2051_v39  ;;  %1032 = vmatpush2.bf16.msra.mxu1 %v2050_v40  ;;  %v2116_v39 = vld [vmem:[#allocation5 + $0x2e4] ss:$8 sps:$4 sm:$0xff]   ;;  %v2114_v40 = vld [vmem:[#allocation5 + $0x2e0] ss:$8 sps:$4 sm:$0xff]  }
  0x8f   : > { %1033 = vmatprep.subr.bf16.mxu1 %v2054_v41  ;;  %v2119_v41 = vld [vmem:[#allocation5 + $0x2d4] ss:$8 sps:$4 sm:$0xff]  }
  0x91   : > { %991 = vmatpush2.bf16.msra.mxu0 %v2053_v42  ;;  %v2117_v42 = vld [vmem:[#allocation5 + $0x2d0] ss:$8 sps:$4 sm:$0xff]  }
  0x92   : > { %992 = vmatprep.subr.bf16.mxu0 %v2057_v43  ;;  %1034 = vmatpush2.bf16.msra.mxu1 %v2056_v44  ;;  %v2122_v43 = vld [vmem:[#allocation5 + $0x2c4] ss:$8 sps:$4 sm:$0xff]   ;;  %v2120_v44 = vld [vmem:[#allocation5 + $0x2c0] ss:$8 sps:$4 sm:$0xff]  }
  0x93   : > { %1035 = vmatprep.subr.bf16.mxu1 %v2060_v45  ;;  %v2125_v45 = vld [vmem:[#allocation5 + $0x2b4] ss:$8 sps:$4 sm:$0xff]  }
  0x95   : > { %993 = vmatpush2.bf16.msra.mxu0 %v2059_v48  ;;  %v2126_v48 = vld [vmem:[#allocation5 + $0x2a0] ss:$8 sps:$4 sm:$0xff]  }
  0x96   : > { %994 = vmatprep.subr.bf16.mxu0 %v2063_v50  ;;  %1036 = vmatpush2.bf16.msra.mxu1 %v2062_v51  ;;  %v2129_v50 = vld [vmem:[#allocation5 + $0x290] ss:$8 sps:$4 sm:$0xff]   ;;  %v2137_v51 = vld [vmem:[#allocation5 + $0x284] ss:$8 sps:$4 sm:$0xff]  }
  0x97   : > { %1037 = vmatprep.subr.bf16.mxu1 %v2066_v54  ;;  %v356_v54 = vld [vmem:[%s2575_s12 + $0x58] sm:$0xff]  ;;  %s1588_s12 = scalar_lea.sflag [#allocation4], %s2571_s22 }
  0x98   : > { %v363_v55 = vpack.c.bf16 %v356_v54, %v349_v53 }
  0x99   : > { %995 = vmatpush2.bf16.msra.mxu0 %v2065_v56  ;;  %v2138_v56 = vld [vmem:[#allocation7 + $0x70] ss:$8 sps:$4 sm:$0xff]  }
  0x9a   : > { %996 = vmatprep.subr.bf16.mxu0 %v2069_v57  ;;  %1038 = vmatpush2.bf16.msra.mxu1 %v2068_v58  ;;  %v2140_v57 = vld [vmem:[#allocation7 + $0x74] ss:$8 sps:$4 sm:$0xff]   ;;  %v2143_v58 = vld [vmem:[#allocation7 + $0x64] ss:$8 sps:$4 sm:$0xff]  }
  0x9b   : > { %1039 = vmatprep.subr.bf16.mxu1 %v2072_v59  ;;  %v2141_v59 = vld [vmem:[#allocation7 + $0x60] ss:$8 sps:$4 sm:$0xff]  }
  0x9d   : > { %997 = vmatpush2.bf16.msra.mxu0 %v2071_v60  ;;  %v2146_v60 = vld [vmem:[#allocation7 + $0x54] ss:$8 sps:$4 sm:$0xff]  }
  0x9e   : > { %998 = vmatprep.subr.bf16.mxu0 %v2075_v61  ;;  %1040 = vmatpush2.bf16.msra.mxu1 %v2074_v62  ;;  %v2144_v61 = vld [vmem:[#allocation7 + $0x50] ss:$8 sps:$4 sm:$0xff]   ;;  %v2149_v62 = vld [vmem:[#allocation7 + $0x44] ss:$8 sps:$4 sm:$0xff]  }
  0x9f   : > { %1041 = vmatprep.subr.bf16.mxu1 %v2078_v63  ;;  %v2147_v63 = vld [vmem:[#allocation7 + $0x40] ss:$8 sps:$4 sm:$0xff]  }
  0xa1   : > { %999 = vmatpush2.bf16.msra.mxu0 %v2077_v0  ;;  %v2152_v0 = vld [vmem:[#allocation7 + $0x34] ss:$8 sps:$4 sm:$0xff]  }
  0xa2   : > { %1000 = vmatprep.subr.bf16.mxu0 %v2081_v2  ;;  %1042 = vmatpush2.bf16.msra.mxu1 %v2080_v1  ;;  %v2150_v1 = vld [vmem:[#allocation7 + $0x30] ss:$8 sps:$4 sm:$0xff]   ;;  %v2155_v2 = vld [vmem:[#allocation7 + $0x24] ss:$8 sps:$4 sm:$0xff]  }
  0xa3   : > { %1043 = vmatprep.subr.bf16.mxu1 %v2084_v4  ;;  %v2158_v4 = vld [vmem:[#allocation7 + $0x14] ss:$8 sps:$4 sm:$0xff]  }
  0xa5   : > { %1001 = vmatpush2.bf16.msra.mxu0 %v2083_v3  ;;  %v2153_v3 = vld [vmem:[#allocation7 + $0x20] ss:$8 sps:$4 sm:$0xff]  }
  0xa6   : > { %1056 = vmatprep.subr.bf16.mxu0 %v2089_v8  ;;  %1044 = vmatpush2.bf16.msra.mxu1 %v2086_v6  ;;  %v2161_v6 = vld [vmem:[#allocation7 + $0x4] ss:$8 sps:$4 sm:$0xff]   ;;  %v2164_v8 = vld [vmem:[#allocation7 + $0xf4] ss:$8 sps:$4 sm:$0xff]  }
  0xa7   : > { %1113 = vmatprep.subr.bf16.mxu1 %v2134_v16  ;;  %v2176_v16 = vld [vmem:[#allocation7 + $0xb4] ss:$8 sps:$4 sm:$0xff]  }
  0xa8   : > { %1003 = vmatmul.mubr.bf16.vlgmr.msra.gmra.mxu0 %v359_v11  ;;  %v2165_v11 = vld [vmem:[#allocation7 + $0xe0] ss:$8 sps:$4 sm:$0xff]  }
  0xa9   : > { %1057 = vmatpush1.bf16.msra.mxu0 %v2087_v12  ;;  %1046 = vmatmul.mubr.bf16.vlgmr.msra.gmra.mxu1 %v361_v13  ;;  %v2170_v12 = vld [vmem:[#allocation7 + $0xd4] ss:$8 sps:$4 sm:$0xff]   ;;  %v2168_v13 = vld [vmem:[#allocation7 + $0xd0] ss:$8 sps:$4 sm:$0xff]  }
  0xaa   : > { %1058 = vmatprep.subr.bf16.mxu0 %v2092_v14  ;;  %1131 = vmatprep.mubr.bf16.mxu1 %v2392_v21  ;;  %v2173_v14 = vld [vmem:[#allocation7 + $0xc4] ss:$8 sps:$4 sm:$0xff]   ;;  %v2180_v21 = vld [vmem:[#allocation7 + $0x90] ss:$8 sps:$4 sm:$0xff]  }
  0xab   : > { %1114 = vmatpush1.bf16.msra.mxu1 %v2132_v15  ;;  %1088 = vmatprep.mubr.bf16.mxu0 %v364_v26  ;;  %v2171_v15 = vld [vmem:[#allocation7 + $0xc0] ss:$8 sps:$4 sm:$0xff]   ;;  %v2188_v26 = vld [vmem:[#allocation8 + $0x70] sm:$0xff]  }
  0xac   : > { %1352 = vmatprep.subr.bf16.mxu1 %v2140_v57 }
  0xad   : > { %1059 = vmatpush1.bf16.msra.mxu0 %v2090_v17  ;;  %v2174_v17 = vld [vmem:[#allocation7 + $0xb0] ss:$8 sps:$4 sm:$0xff]  }
  0xae   : > { %1060 = vmatprep.subr.bf16.mxu0 %v2095_v18  ;;  %v2179_v18 = vld [vmem:[#allocation7 + $0xa4] ss:$8 sps:$4 sm:$0xff]  }
  0xb1   : > { %1061 = vmatpush1.bf16.msra.mxu0 %v2093_v20  ;;  %1815 = vmatmul.mubr.msk.bf16.vlgmr.msra.gmra.mxu1 %vm966_vm0, %v365_v27  ;;  %v2182_v20 = vld [vmem:[#allocation7 + $0x94] ss:$8 sps:$4 sm:$0xff]  }
  0xb2   : > { %1062 = vmatprep.subr.bf16.mxu0 %v2098_v25  ;;  %1353 = vmatpush1.bf16.msra.mxu1 %v2138_v56  ;;  %v2187_v25 = vld [vmem:[#allocation8 + $0x38] sm:$0xff]   ;;  %v2189_v27 = vld [vmem:[#allocation8 + $0x30] sm:$0xff]  }
  0xb3   : > { %1354 = vmatprep.subr.bf16.mxu1 %v2143_v58 }
  0xb5   : > { %1063 = vmatpush1.bf16.msra.mxu0 %v2096_v28  ;;  %v2190_v28 = vld [vmem:[#allocation8 + $0x68] sm:$0xff]  }
  0xb6   : > { %1064 = vmatprep.subr.bf16.mxu0 %v2101_v29  ;;  %1355 = vmatpush1.bf16.msra.mxu1 %v2141_v59  ;;  %v2191_v29 = vld [vmem:[#allocation8 + $0x28] sm:$0xff]  }
  0xb7   : > { %1356 = vmatprep.subr.bf16.mxu1 %v2146_v60 }
  0xb9   : > { %1065 = vmatpush1.bf16.msra.mxu0 %v2099_v30  ;;  %v2192_v30 = vld [vmem:[#allocation8 + $0x60] sm:$0xff]  }
  0xba   : > { %1066 = vmatprep.subr.bf16.mxu0 %v2104_v31  ;;  %1357 = vmatpush1.bf16.msra.mxu1 %v2144_v61  ;;  %v2193_v31 = vld [vmem:[#allocation8 + $0x20] sm:$0xff]  }
  0xbb   : > { %1358 = vmatprep.subr.bf16.mxu1 %v2149_v62 }
  0xbd   : > { %1067 = vmatpush1.bf16.msra.mxu0 %v2102_v32  ;;  %v2194_v32 = vld [vmem:[#allocation8 + $0x58] sm:$0xff]  }
  0xbe   : > { %1068 = vmatprep.subr.bf16.mxu0 %v2107_v33  ;;  %1359 = vmatpush1.bf16.msra.mxu1 %v2147_v63  ;;  %v2195_v33 = vld [vmem:[#allocation8 + $0x18] sm:$0xff]  }
  0xbf   : > { %1360 = vmatprep.subr.bf16.mxu1 %v2152_v0 }
  0xc1   : > { %1069 = vmatpush1.bf16.msra.mxu0 %v2105_v34  ;;  %v466_v34 = vlaneseq }
  0xc2   : > { %1070 = vmatprep.subr.bf16.mxu0 %v2110_v35  ;;  %1361 = vmatpush1.bf16.msra.mxu1 %v2150_v1 }
  0xc3   : > { %1362 = vmatprep.subr.bf16.mxu1 %v2155_v2 }
  0xc5   : > { %1071 = vmatpush1.bf16.msra.mxu0 %v2108_v36  ;;  %v467_v36 = vshrl.u32 %v466_v34, 7 }
  0xc6   : > { %1072 = vmatprep.subr.bf16.mxu0 %v2113_v37  ;;  %1363 = vmatpush1.bf16.msra.mxu1 %v2153_v3 }
  0xc7   : > { %1364 = vmatprep.subr.bf16.mxu1 %v2158_v4 }
  0xc9   : > { %1073 = vmatpush2.bf16.msra.mxu0 %v2111_v38 }
  0xca   : > { %1074 = vmatprep.subr.bf16.mxu0 %v2116_v39  ;;  %1365 = vmatpush1.bf16.msra.mxu1 %v2156_v5  ;;  %v472_v39 = vsub.s32 1, %v467_v36 }
  0xcb   : > { %1366 = vmatprep.subr.bf16.mxu1 %v2161_v6 }
  0xcd   : > { %1075 = vmatpush2.bf16.msra.mxu0 %v2114_v40  ;;  %v464_v40 = vld [vmem:[%s2664_s2] sm:$0x3] }
  0xce   : > { %1076 = vmatprep.subr.bf16.mxu0 %v2119_v41  ;;  %1367 = vmatpush1.bf16.msra.mxu1 %v2159_v7  ;;  %v468_v41 = vsub.s32 0, %v467_v36 }
  0xcf   : > { %1368 = vmatprep.subr.bf16.mxu1 %v2164_v8 }
  0xd1   : > { %1077 = vmatpush2.bf16.msra.mxu0 %v2117_v42 }
  0xd2   : > { %1078 = vmatprep.subr.bf16.mxu0 %v2122_v43  ;;  %1369 = vmatpush2.bf16.msra.mxu1 %v2162_v9 }
  0xd3   : > { %1370 = vmatprep.subr.bf16.mxu1 %v2167_v10 }
  0xd5   : > { %1079 = vmatpush2.bf16.msra.mxu0 %v2120_v44  ;;  %v473_v44 = vrot.slane %v464_v40, %v472_v39 }
  0xd6   : > { %1080 = vmatprep.subr.bf16.mxu0 %v2125_v45  ;;  %1371 = vmatpush2.bf16.msra.mxu1 %v2165_v11  ;;  %v469_v45 = vrot.slane %v464_v40, %v468_v41 }
  0xd7   : > { %1372 = vmatprep.subr.bf16.mxu1 %v2170_v12 }
  0xd9   : > { %1081 = vmatpush2.bf16.msra.mxu0 %v2123_v46 }
  0xda   : > { %1082 = vmatprep.subr.bf16.mxu0 %v2128_v47  ;;  %1373 = vmatpush2.bf16.msra.mxu1 %v2168_v13 }
  0xdb   : > { %1374 = vmatprep.subr.bf16.mxu1 %v2173_v14 }
  0xdd   : > { %1083 = vmatpush2.bf16.msra.mxu0 %v2126_v48 }
  0xde   : > { %1084 = vmatprep.subr.bf16.mxu0 %v2131_v49  ;;  %1375 = vmatpush2.bf16.msra.mxu1 %v2171_v15  ;;  %v2196_v15 = vld [vmem:[#allocation8 + $0x50] sm:$0xff]  }
  0xdf   : > { %1376 = vmatprep.subr.bf16.mxu1 %v2176_v16  ;;  %v2197_v16 = vld [vmem:[#allocation8 + $0x10] sm:$0xff]  }
  0xe1   : > { %1085 = vmatpush2.bf16.msra.mxu0 %v2129_v50 }
  0xe2   : > { %1086 = vmatprep.subr.bf16.mxu0 %v2137_v51  ;;  %1377 = vmatpush2.bf16.msra.mxu1 %v2174_v17  ;;  %v2198_v17 = vld [vmem:[#allocation8 + $0x48] sm:$0xff]  }
  0xe3   : > { %1378 = vmatprep.subr.bf16.mxu1 %v2179_v18  ;;  %v2199_v18 = vld [vmem:[#allocation8 + $0x8] sm:$0xff]  }
  0xe5   : > { %1087 = vmatpush2.bf16.msra.mxu0 %v2135_v52 }
  0xe6   : > { %1379 = vmatpush2.bf16.msra.mxu1 %v2177_v19  ;;  %1880 = vmatprep.subr.bf16.mxu0 %v2186_v24  ;;  %v2200_v19 = vld [vmem:[#allocation8 + $0x40] sm:$0xff]  }
  0xe7   : > { %1380 = vmatprep.subr.bf16.mxu1 %v2182_v20  ;;  %v2201_v20 = vld [vmem:[#allocation8] sm:$0xff]  }
  0xe8   : > { %1089 = vmatmul.mubr.bf16.vlgmr.msra.gmra.mxu0 %v363_v55 }
  0xe9   : > { %1881 = vmatpush3.bf16.msra.mxu0 %v2187_v25 }
  0xea   : > { %1381 = vmatpush2.bf16.msra.mxu1 %v2180_v21  ;;  %1882 = vmatprep.subr.bf16.mxu0 %v2188_v26  ;;  %v1180_v21 = vld [vmem:[%s2666_s4] sm:$0x3] }
  0xeb   : > { %1382 = vmatprep.subr.bf16.mxu1 %v2185_v22  ;;  %v1185_v24 = vrot.slane %v1180_v21, %v468_v41 }
  0xed   : > { %1883 = vmatpush3.bf16.msra.mxu0 %v2189_v27 }
  0xee   : > { %1383 = vmatpush2.bf16.msra.mxu1 %v2183_v23  ;;  %1884 = vmatprep.subr.bf16.mxu0 %v2190_v28  ;;  %v1189_v23 = vrot.slane %v1180_v21, %v472_v39 }
  0xf1   : > { %1885 = vmatpush3.bf16.msra.mxu0 %v2191_v29 }
  0xf2   : > { %1886 = vmatprep.subr.bf16.mxu0 %v2192_v30 }
  0xf5   : > { %1887 = vmatpush3.bf16.msra.mxu0 %v2193_v31 }
  0xf6   : > { %1888 = vmatprep.subr.bf16.mxu0 %v2194_v32 }
  0xf9   : > { %1889 = vmatpush3.bf16.msra.mxu0 %v2195_v33 }
  0xfa   : > { %1890 = vmatprep.subr.bf16.mxu0 %v2196_v15 }
  0xfd   : > { %1891 = vmatpush3.bf16.msra.mxu0 %v2197_v16 }
  0xfe   : > { %1892 = vmatprep.subr.bf16.mxu0 %v2198_v17 }
 0x101   : > { %1893 = vmatpush3.bf16.msra.mxu0 %v2199_v18 }
 0x102   : > { %1894 = vmatprep.subr.bf16.mxu0 %v2200_v19 }
 0x105   : > { %1895 = vmatpush3.bf16.msra.mxu0 %v2201_v20 }
 0x168   : > { %v1004_v37 = vpop.f32.mrf.mxu0 }
 0x169   : > { %v1047_v35 = vpop.f32.mrf.mxu1  ;;  %v1005_v50 = vadd.f32 %v1004_v37, %v469_v45 }
 0x16a   : > { %v1006_v42 = vpop.f32.mrf.mxu0 }
 0x16b   : > { %v1049_v38 = vpop.f32.mrf.mxu1  ;;  %v1007_v49 = vadd.f32 %v1006_v42, %v473_v44  ;;  %v1048_v57 = vadd.f32 %v1047_v35, %v1005_v50  ;;  %v1848_v42 = vld [vmem:[%s2668_s6] ss:$0 sm:$0xff] }
 0x16c   : > { %v1008_v46 = vpop.f32.mrf.mxu0 }
 0x16d   : > { %v1051_v43 = vpop.f32.mrf.mxu1  ;;  %v1009_v52 = vadd.f32 %v1008_v46, %v469_v45  ;;  %v1050_v55 = vadd.f32 %v1049_v38, %v1007_v49 }
 0x16e   : > { %v1010_v51 = vpop.f32.mrf.mxu0 }
 0x16f   : > { %v1053_v47 = vpop.f32.mrf.mxu1  ;;  %v1011_v56 = vadd.f32 %v1010_v51, %v473_v44  ;;  %v1052_v59 = vadd.f32 %v1051_v43, %v1009_v52 }
 0x171   : > { %v1133_v48 = vpop.f32.mrf.mxu1  ;;  %v1054_v0 = vadd.f32 %v1053_v47, %v1011_v56 }
 0x173   : > { %v1135_v53 = vpop.f32.mrf.mxu1 }
 0x175   : > { %v1137_v62 = vpop.f32.mrf.mxu1 }
 0x177   : > { %v1139_v7 = vpop.f32.mrf.mxu1 }
 0x1a8   : > { %v1090_v54 = vpop.f32.mrf.mxu0 }
 0x1a9   : > { %v1091_v61 = vadd.f32 %v1090_v54, %v1048_v57 }
 0x1aa   : > { %v1092_v58 = vpop.f32.mrf.mxu0 }
 0x1ab   : > { %v1093_v60 = vadd.f32 %v1092_v58, %v1050_v55  ;;  %v1134_v6 = vadd.f32 %v1133_v48, %v1091_v61 }
 0x1ac   : > { %v1094_v63 = vpop.f32.mrf.mxu0 }
 0x1ad   : > { %v1095_v1 = vadd.f32 %v1094_v63, %v1052_v59  ;;  %v1136_v3 = vadd.f32 %v1135_v53, %v1093_v60  ;;  %v1142_v12 = vmax.f32 %v1134_v6, 0.0 }
 0x1ae   : > { %v1096_v2 = vpop.f32.mrf.mxu0 }
 0x1af   : > { %v1138_v4 = vadd.f32 %v1137_v62, %v1095_v1  ;;  %v1097_v5 = vadd.f32 %v1096_v2, %v1054_v0  ;;  %v1143_v10 = vmax.f32 %v1136_v3, 0.0 }
 0x1b1   : > { %v1140_v8 = vadd.f32 %v1139_v7, %v1097_v5  ;;  %v1144_v9 = vmax.f32 %v1138_v4, 0.0 }
 0x1b3   : > { %v1145_v11 = vmax.f32 %v1140_v8, 0.0  ;;  %v1146_v14 = vpack.c.bf16 %v1144_v9, %v1142_v12 }
 0x1b5   : > { %v1147_v13 = vpack.c.bf16 %v1145_v11, %v1143_v10 }
 0x1b7   : > { %1384 = vmatprep.mubr.bf16.mxu1 %v1147_v13 }
 0x1b8   : > { %1385 = vmatmul.mubr.bf16.vlgmr.msra.gmra.mxu1 %v1146_v14 }
 0x278   : > { %v1386_v22 = vpop.f32.mrf.mxu1 }
 0x279   : > { %v1387_v29 = vadd.f32 %v1386_v22, %v1185_v24 }
 0x27a   : > { %v1388_v25 = vpop.f32.mrf.mxu1 }
 0x27b   : > { %v1389_v27 = vadd.f32 %v1388_v25, %v1189_v23  ;;  %v1395_v35 = vmax.f32 %v1387_v29, 0.0 }
 0x27c   : > { %v1390_v26 = vpop.f32.mrf.mxu1 }
 0x27d   : > { %v1391_v28 = vadd.f32 %v1390_v26, %v1185_v24  ;;  %v1396_v33 = vmax.f32 %v1389_v27, 0.0 }
 0x27e   : > { %v1392_v30 = vpop.f32.mrf.mxu1 }
 0x27f   : > { %v1393_v31 = vadd.f32 %v1392_v30, %v1189_v23  ;;  %v1397_v32 = vmax.f32 %v1391_v28, 0.0 }
 0x281   : > { %v1398_v34 = vmax.f32 %v1393_v31, 0.0  ;;  %v1399_v37 = vpack.c.bf16 %v1397_v32, %v1395_v35 }
 0x283   : > { %v1400_v36 = vpack.c.bf16 %v1398_v34, %v1396_v33 }
 0x285   : > { %1568 = vmatprep.mubr.bf16.mxu0 %v1400_v36 }
 0x286   : > { %1569 = vmatmul.mubr.bf16.vlgmr.msra.gmra.mxu0 %v1399_v37 }
 0x346   : > { %v1896_v38 = vpop.f32.mrf.mxu0 }
 0x348   : > { %v1897_v39 = vpop.f32.mrf.mxu0 }
 0x349   : > { %v1898_v41 = vadd.f32 %v1897_v39, %v1896_v38 }
 0x34a   : > { %v1899_v40 = vpop.f32.mrf.mxu0 }
 0x34b   : > { %v1571_v45 = vadd.f32 %v1898_v41, %v1848_v42 }
 0x34c   : > { %v1900_v43 = vpop.f32.mrf.mxu0 }
 0x34d   : > { %v1901_v44 = vadd.f32 %v1900_v43, %v1899_v40 }
 0x34f   : > { %v1574_v46 = vadd.f32 %v1901_v44, %v1848_v42 }
 0x351   : > { %v1878_v47 = vpack.c.bf16 %v1574_v46, %v1571_v45 }
 0x353   : > { %1879 = vst [vmem:[%s341_s19] sm:$0xff] %v1878_v47  }
 0x354   : > { %2321 = shalt.err (!%p2318_p9)
}
 0x355   : > { %s2322_s11 = scalar_lea.hbm %s2617_s29, 128  ;;  %s2326_s16 = scalar_lea.hbm %s2669_s7, 256 }
 0x356   : > { %p2323_p1 = scmp.ne.s32.totalorder %s2617_s29, %s2322_s11  ;;  %p2327_p11 = scmp.lt.s32.totalorder %s2617_s29, %s2669_s7 }
 0x357   : > { %p2328_p13 = scmp.lt.s32.totalorder %s2326_s16, %s2322_s11 }
 0x358   : > { %p2324_p8 = pnand %p2323_p1, %p2689_p6 }
 0x359   : > { %p2329_p2 = por %p2328_p13, %p2327_p11 }
 0x35a   : > { %p2325_p10 = pneg %p2324_p8 }
 0x35c   : > { %p2330_p4 = pnand %p2329_p2, %p2325_p10 }
 0x35e   : > { %2333 = shalt.err (!%p2330_p4)
}
 0x35f   : > { %s2394_s18 = smov 64   ;;  %s2395_s23 = smov 4  }
 0x360   : > { %1919 = dma.vmem_to_hbm [thread:$0]  (%p2689_p6), %s2619_s1, 128, %s2617_s29, %s1588_s12, %s2394_s18, %s2394_s18, %s2395_s23  }
 0x361 PF: > { %s1616_s30 = sand.u32 1, %s2368_s24   ;;  %p2690_p12 = scmp.ne.s32.totalorder %s2676_s8, 0 }
 0x362   : > { %p2691_p0 = scmp.ge.s32.totalorder %s2380_s27, 2  ;;  %s1617_s28 = scalar_lea.sflag [#allocation4], %s1616_s30 }
 0x364   : > { %p1936_p5 = pnand %p2691_p0, %p2690_p12 }
 0x366   : > { %p1937_p3 = pneg %p1936_p5 }
 0x368   : > { %2363 = dma.done.wait (%p1937_p3), %s1617_s28, 128  }
 0x369   : > { %2365 = vsyncadd (%p1937_p3), %s1617_s28, 4294967168  ;;  %p22_p7 = scmp.ge.s32.totalorder %s2516_s17, 4   ;;  %s2692_s24 = smov %s2372_s25 }
 0x36a   : > { %s2693_s25 = smov %s2376_s26  ;;  %s2694_s26 = smov %s2526_s20 }
 0x36b   : > { %s2695_s27 = smov %s2516_s17  ;;  %24 = sbr.rel (!%p22_p7) target bundleno = 9 (0x9), region = 105 }
 0x370   :  { %1622 = vsyncpa [#allocation3], 1 }
 0x371   :  { %1624 = vsyncpa [#allocation3 + $0x1], 1 }
 0x372   :  { %1625 = vsyncpa [#allocation6], 1 }
 0x373   :  { %1626 = vsyncpa [#allocation9], 1 }
 0x374   :  { %1627 = vsyncpa [#allocation4], 1 }
 0x375   :  { %1629 = vsyncpa [#allocation4 + $0x1], 1 }

</bundles_post_ra>
